<compile_context>
chip_gen: v6e
topology: v6e:2x2x1
jax: 0.10.0
libtpu: 0.0.40
codegen_flags: <defaults>
</compile_context>

<pallas_src>
import jax
import jax.numpy as jnp
from jax.experimental import pallas as pl
from jax.experimental.pallas import tpu as pltpu


def _dwconv_bias_kernel(x_ref, w_ref, b_ref, o_ref):
    """Depthwise 1-D conv along lanes ('same' zero padding) + positional bias.

    x_ref: (tr, L)   rows = flattened (group, batch), lanes = sequence position
    w_ref: (tr, K)   K-tap filter for each row (per-group weight repeated per batch)
    b_ref: (tr, L)   positional bias for each row
    o_ref: (tr, L)   output tile
    """
    tr, L = x_ref.shape
    K = w_ref.shape[-1]
    window = (K - 1) // 2

    # Hoist loads / casts out of the tap loop (JAX does not CSE these).
    x = x_ref[...]                                   # native dtype; widened in the FMA
    w = w_ref[...].astype(jnp.float32)               # (tr, K)
    lane = jax.lax.broadcasted_iota(jnp.int32, (1, L), 1)

    # Initialise the accumulator from the bias -> no final "+ bias" add.
    acc = b_ref[...].astype(jnp.float32)             # (tr, L)

    # K is tiny and static -> unrolled Python loop.  Each tap: lane rotation on the
    # XLU (free slot) + boundary mask (VPU compare/select) + per-row scalar FMA.
    for k in range(K):
        s = window - k                                # lane shift of this tap
        shift = s % L
        shifted = pltpu.roll(x, shift, axis=1) if shift else x   # positive axis!
        if s > 0:        # tap reads before position 0 -> zero ('same' padding)
            shifted = jnp.where(lane >= s, shifted, 0.0)
        elif s < 0:      # tap reads past position L-1 -> zero
            shifted = jnp.where(lane < L + s, shifted, 0.0)
        acc = acc + w[:, k:k + 1] * shifted           # widens to f32 in the multiply

    o_ref[...] = acc.astype(o_ref.dtype)


def _pick_row_tile(R, L, K, in_itemsize, bias_itemsize,
                   *, vmem_limit_bytes, min_steps=4):
    """Row-tile size: sublane-aligned, VMEM-budgeted, keeps the grid pipelined.

    Working set per tile (padding-aware, rows are already sublane multiples):
      in + out double-buffered tiles, bias/weight double-buffered tiles, and the
      f32 compute intermediates (taps + accumulator).  Budget is 3/4 of the scoped
      VMEM limit actually requested, leaving headroom for spills on every
      generation (v5e/v6e 128 MiB physical, v7x 64 MiB).
    """
    sublane = 8 if in_itemsize >= 4 else (16 if in_itemsize == 2 else 32)
    if R <= sublane:
        return R                                       # full-dim block (always legal)

    budget = (vmem_limit_bytes * 3) // 4

    def working_set(tr):
        io = 4 * tr * L * in_itemsize                  # in + out, double buffered
        bias = 2 * tr * L * bias_itemsize              # bias tile, double buffered
        wts = 2 * tr * K * 4                           # weights (tiny)
        live = 4 * tr * L * 4                          # taps + f32 accumulator
        return io + bias + wts + live

    max_by_budget = max(sublane, (budget // working_set(1)) // sublane * sublane)
    # Keep >= min_steps grid steps so DMA/compute overlap and (on v7x) both
    # TensorCores get work; never drop below one sublane of rows.
    max_by_steps = max(sublane, (R // min_steps) // sublane * sublane)
    tr = min(max_by_budget, max_by_steps)
    # Never exceed the (sublane-padded) row count.
    tr = min(tr, pl.cdiv(R, sublane) * sublane)
    return tr


def conv_model_forward(x, weight, positional_bias, window):
    """Pallas equivalent of Conv_Model.forward (groups != 1 branch).

    x:               (groups, batch, L)
    weight:          (groups, 1, 2*window+1)   -- torch Conv1d depthwise weight shape
    positional_bias: (1, groups, L)
    returns:         (groups, batch, L)
    """
    G, B, L = x.shape
    K = weight.shape[-1]
    assert K == 2 * window + 1
    assert K <= 2 * L - 1, "roll-shift aliasing: kernel taps must stay within one period"
    assert weight.shape == (G, 1, K)
    assert positional_bias.shape == (1, G, L)

    R = G * B
    # Sublane-dense 2-D layout: rows are (group, batch) pairs in native memory order.
    x2 = x.reshape(R, L)
    w2 = jnp.repeat(weight.reshape(G, K), B, axis=0)               # (R, K)
    b2 = jnp.repeat(positional_bias.reshape(G, L), B, axis=0)      # (R, L)

    vmem_limit = 32 * 1024 * 1024
    tr = _pick_row_tile(R, L, K, x.dtype.itemsize, b2.dtype.itemsize,
                        vmem_limit_bytes=vmem_limit)
    grid = (pl.cdiv(R, tr),)

    out2 = pl.pallas_call(
        _dwconv_bias_kernel,
        out_shape=jax.ShapeDtypeStruct((R, L), x.dtype),
        grid_spec=pltpu.PrefetchScalarGridSpec(
            num_scalar_prefetch=0,
            grid=grid,
            in_specs=[
                pl.BlockSpec((tr, L), lambda r: (r, 0)),   # x rows
                pl.BlockSpec((tr, K), lambda r: (r, 0)),   # per-row weights
                pl.BlockSpec((tr, L), lambda r: (r, 0)),   # per-row bias
            ],
            out_specs=pl.BlockSpec((tr, L), lambda r: (r, 0)),
        ),
        compiler_params=pltpu.CompilerParams(
            dimension_semantics=("parallel",),             # megacore-splittable rows
            vmem_limit_bytes=vmem_limit,
        ),
    )(x2, w2, b2)

    return out2.reshape(G, B, L)


def conv_model_reference(x, weight, positional_bias, window):
    """Pure-JAX reference mirroring the torch forward exactly."""
    G, B, L = x.shape
    K = weight.shape[-1]
    xt = jnp.transpose(x, (1, 0, 2))                             # (B, G, L)
    xp = jnp.pad(xt, ((0, 0), (0, 0), (window, window)))
    w2 = weight.reshape(G, K)
    out = jnp.zeros((B, G, L), jnp.float32)
    for k in range(K):
        out = out + w2[None, :, k:k + 1] * xp[:, :, k:k + L]
    out = out + positional_bias
    return jnp.transpose(out, (1, 0, 2)).astype(x.dtype)


if __name__ == "__main__":
    # Small shapes consistent with the module (groups scaled down from 1200).
    groups = 8
    batch = 2
    att_block_size = 128
    window = 2
    K = 2 * window + 1

    key = jax.random.PRNGKey(0)
    kx, kw, kb = jax.random.split(key, 3)

    # The module zero-inits the params (output would be trivially zero); keep the
    # exact parameter SHAPES but use deterministic random values for a real check.
    x = jax.random.normal(kx, (groups, batch, att_block_size), jnp.float32)
    weight = jax.random.normal(kw, (groups, 1, K), jnp.float32) * 0.1
    positional_bias = jax.random.normal(kb, (1, groups, att_block_size),
                                        jnp.float32) * 0.1

    out = conv_model_forward(x, weight, positional_bias, window)
    out = jax.block_until_ready(out)

    ref = conv_model_reference(x, weight, positional_bias, window)
    assert out.shape == (groups, batch, att_block_size)
    assert jnp.allclose(out, ref, atol=1e-5, rtol=1e-5), "mismatch vs reference"

    print("KERNEL_OK")
</pallas_src>

<mosaic_0001>
module attributes {stable_mosaic.version = 11 : i64} {
  func.func @_dwconv_bias_kernel(%arg0: i32, %arg1: memref<8x128xf32, #tpu.memory_space<vmem>>, %arg2: memref<8x5xf32, #tpu.memory_space<vmem>>, %arg3: memref<8x128xf32, #tpu.memory_space<vmem>>, %arg4: memref<8x128xf32, #tpu.memory_space<vmem>>) attributes {dimension_semantics = [#tpu.dimension_semantics<parallel>], iteration_bounds = array<i64: 2>, scalar_prefetch = 0 : i64, scratch_operands = 0 : i64, tpu.core_type = #tpu.core_type<tc>, window_params = [{transform_indices = @transform_0, window_bounds = array<i64: 8, 128>}, {transform_indices = @transform_1, window_bounds = array<i64: 8, 5>}, {transform_indices = @transform_2, window_bounds = array<i64: 8, 128>}, {transform_indices = @transform_3, window_bounds = array<i64: 8, 128>}]} {
    %c0 = arith.constant 0 : index
    %c0_0 = arith.constant 0 : index
    %0 = vector.load %arg1[%c0, %c0_0] : memref<8x128xf32, #tpu.memory_space<vmem>>, vector<8x128xf32>
    %c0_1 = arith.constant 0 : index
    %c0_2 = arith.constant 0 : index
    %1 = vector.load %arg2[%c0_1, %c0_2] : memref<8x5xf32, #tpu.memory_space<vmem>>, vector<8x5xf32>
    %2 = tpu.iota {dimensions = array<i32: 1>} : vector<1x128xi32>
    %c0_3 = arith.constant 0 : index
    %c0_4 = arith.constant 0 : index
    %3 = vector.load %arg3[%c0_3, %c0_4] : memref<8x128xf32, #tpu.memory_space<vmem>>, vector<8x128xf32>
    %c2_i32 = arith.constant 2 : i32
    %4 = tpu.dynamic_rotate %0 by %c2_i32 dim 1 : vector<8x128xf32>, i32 -> vector<8x128xf32>
    %c2_i32_5 = arith.constant 2 : i32
    %5 = vector.broadcast %c2_i32_5 : i32 to vector<1x128xi32>
    %6 = arith.cmpi sge, %2, %5 : vector<1x128xi32>
    %cst = arith.constant 0.000000e+00 : f32
    %7 = vector.shape_cast %6 : vector<1x128xi1> to vector<1x128xi1>
    %8 = vector.broadcast %7 : vector<1x128xi1> to vector<8x128xi1>
    %9 = vector.broadcast %cst : f32 to vector<8x128xf32>
    %10 = arith.select %8, %4, %9 : vector<8x128xi1>, vector<8x128xf32>
    %11 = vector.extract_strided_slice %1 {offsets = [0, 0], sizes = [8, 1], strides = [1, 1]} : vector<8x5xf32> to vector<8x1xf32>
    %12 = vector.broadcast %11 : vector<8x1xf32> to vector<8x128xf32>
    %13 = arith.mulf %12, %10 : vector<8x128xf32>
    %14 = arith.addf %3, %13 : vector<8x128xf32>
    %c1_i32 = arith.constant 1 : i32
    %15 = tpu.dynamic_rotate %0 by %c1_i32 dim 1 : vector<8x128xf32>, i32 -> vector<8x128xf32>
    %c1_i32_6 = arith.constant 1 : i32
    %16 = vector.broadcast %c1_i32_6 : i32 to vector<1x128xi32>
    %17 = arith.cmpi sge, %2, %16 : vector<1x128xi32>
    %cst_7 = arith.constant 0.000000e+00 : f32
    %18 = vector.shape_cast %17 : vector<1x128xi1> to vector<1x128xi1>
    %19 = vector.broadcast %18 : vector<1x128xi1> to vector<8x128xi1>
    %20 = vector.broadcast %cst_7 : f32 to vector<8x128xf32>
    %21 = arith.select %19, %15, %20 : vector<8x128xi1>, vector<8x128xf32>
    %22 = vector.extract_strided_slice %1 {offsets = [0, 1], sizes = [8, 1], strides = [1, 1]} : vector<8x5xf32> to vector<8x1xf32>
    %23 = vector.broadcast %22 : vector<8x1xf32> to vector<8x128xf32>
    %24 = arith.mulf %23, %21 : vector<8x128xf32>
    %25 = arith.addf %14, %24 : vector<8x128xf32>
    %26 = vector.extract_strided_slice %1 {offsets = [0, 2], sizes = [8, 1], strides = [1, 1]} : vector<8x5xf32> to vector<8x1xf32>
    %27 = vector.broadcast %26 : vector<8x1xf32> to vector<8x128xf32>
    %28 = arith.mulf %27, %0 : vector<8x128xf32>
    %29 = arith.addf %25, %28 : vector<8x128xf32>
    %c127_i32 = arith.constant 127 : i32
    %30 = tpu.dynamic_rotate %0 by %c127_i32 dim 1 : vector<8x128xf32>, i32 -> vector<8x128xf32>
    %c127_i32_8 = arith.constant 127 : i32
    %31 = vector.broadcast %c127_i32_8 : i32 to vector<1x128xi32>
    %32 = arith.cmpi slt, %2, %31 : vector<1x128xi32>
    %cst_9 = arith.constant 0.000000e+00 : f32
    %33 = vector.shape_cast %32 : vector<1x128xi1> to vector<1x128xi1>
    %34 = vector.broadcast %33 : vector<1x128xi1> to vector<8x128xi1>
    %35 = vector.broadcast %cst_9 : f32 to vector<8x128xf32>
    %36 = arith.select %34, %30, %35 : vector<8x128xi1>, vector<8x128xf32>
    %37 = vector.extract_strided_slice %1 {offsets = [0, 3], sizes = [8, 1], strides = [1, 1]} : vector<8x5xf32> to vector<8x1xf32>
    %38 = vector.broadcast %37 : vector<8x1xf32> to vector<8x128xf32>
    %39 = arith.mulf %38, %36 : vector<8x128xf32>
    %40 = arith.addf %29, %39 : vector<8x128xf32>
    %c126_i32 = arith.constant 126 : i32
    %41 = tpu.dynamic_rotate %0 by %c126_i32 dim 1 : vector<8x128xf32>, i32 -> vector<8x128xf32>
    %c126_i32_10 = arith.constant 126 : i32
    %42 = vector.broadcast %c126_i32_10 : i32 to vector<1x128xi32>
    %43 = arith.cmpi slt, %2, %42 : vector<1x128xi32>
    %cst_11 = arith.constant 0.000000e+00 : f32
    %44 = vector.shape_cast %43 : vector<1x128xi1> to vector<1x128xi1>
    %45 = vector.broadcast %44 : vector<1x128xi1> to vector<8x128xi1>
    %46 = vector.broadcast %cst_11 : f32 to vector<8x128xf32>
    %47 = arith.select %45, %41, %46 : vector<8x128xi1>, vector<8x128xf32>
    %48 = vector.extract_strided_slice %1 {offsets = [0, 4], sizes = [8, 1], strides = [1, 1]} : vector<8x5xf32> to vector<8x1xf32>
    %49 = vector.broadcast %48 : vector<8x1xf32> to vector<8x128xf32>
    %50 = arith.mulf %49, %47 : vector<8x128xf32>
    %51 = arith.addf %40, %50 : vector<8x128xf32>
    %c0_12 = arith.constant 0 : index
    %c0_13 = arith.constant 0 : index
    %52 = vector.load %arg4[%c0_12, %c0_13] : memref<8x128xf32, #tpu.memory_space<vmem>>, vector<8x128xf32>
    tpu.vector_store %arg4[%c0_12, %c0_13], %51 {strides = array<i32>} : memref<8x128xf32, #tpu.memory_space<vmem>>, vector<8x128xf32>,
    return
  }
  func.func @transform_0(%arg0: i32) -> (i32, i32) {
    %c0_i32 = arith.constant 0 : i32
    %c0_i32_0 = arith.constant 0 : i32
    return %arg0, %c0_i32 : i32, i32
  }
  func.func @transform_1(%arg0: i32) -> (i32, i32) {
    %c0_i32 = arith.constant 0 : i32
    %c0_i32_0 = arith.constant 0 : i32
    return %arg0, %c0_i32 : i32, i32
  }
  func.func @transform_2(%arg0: i32) -> (i32, i32) {
    %c0_i32 = arith.constant 0 : i32
    %c0_i32_0 = arith.constant 0 : i32
    return %arg0, %c0_i32 : i32, i32
  }
  func.func @transform_3(%arg0: i32) -> (i32, i32) {
    %c0_i32 = arith.constant 0 : i32
    %c0_i32_0 = arith.constant 0 : i32
    return %arg0, %c0_i32 : i32, i32
  }
}

</mosaic_0001>

<bundles_post_ra>
// kernel: tpu_custom_call.1
= control target key start
LH: loop header
LB: loop body
LE: loop exit
PB: predicated region body
PF: predicated region fallthrough
CT: control target
= control target key end

     0   :  { %8 = vsyncpa [#allocation3], 0  ;;  %s745_s0 = inlined_call_operand.vmem [shape: f32[16,128], index: 0, kind: input, shape index: {}]   ;;  %s746_s1 = inlined_call_operand.vmem [shape: f32[16,5], index: 1, kind: input, shape index: {}]   ;;  %s747_s2 = inlined_call_operand.hbm [shape: f32[16,128], index: 2, kind: input, shape index: {}]   ;;  %s748_s3 = inlined_call_operand.hbm [shape: f32[16,128], index: 3, kind: output, shape index: {}]  }
   0x1   :  { %10 = vsyncpa [#allocation3 + $0x1], 0 }
   0x2   :  { %11 = vsyncpa [#allocation4], 0 }
   0x3   :  { %13 = vsyncpa [#allocation4 + $0x1], 0  ;;  %s589_s12 = smov 0   ;;  %s591_s13 = smov 0  }
   0x4   :  { %s593_s14 = smov 0   ;;  %s595_s15 = smov 0  }
   0x5 LB: > { %s610_s16 = sadd.s32 4294967295, %s556_s15   ;;  %s389_s17 = sadd.s32 4294967294, %s556_s15   ;;  %s556_s15 = sphi %s595_s15, %s765_s15   ;;  %s552_s14 = sphi %s593_s14, %s764_s14   ;;  %s548_s13 = sphi %s591_s13, %s763_s13   ;;  %s544_s12 = sphi %s589_s12, %s762_s12  }
   0x6   : > { %s614_s18 = sadd.s32 1, %s556_s15   ;;  %s78_s19 = sadd.s32 1, %s552_s14 }
   0x7   : > { %s75_s20 = ssub.s32 %s556_s15, %s614_s18  ;;  %p85_p0 = scmp.ne.s32.totalorder %s552_s14, %s548_s13 }
   0x8   : > { %p76_p1 = scmp.eq.s32.totalorder %s75_s20, 0  ;;  %p86_p2 = scmp.eq.s32.totalorder %s556_s15, 0 }
   0x9   : > { %p91_p3 = scmp.ne.s32.totalorder %s548_s13, %s544_s12  ;;  %p92_p4 = scmp.eq.s32.totalorder %s610_s16, 0 }
   0xa   : > { %s626_s21 = scalar_select %p76_p1, %s552_s14, %s78_s19  }
   0xb   : > { %p628_p5 = por %p86_p2, %p85_p0  ;;  %p632_p6 = por %p92_p4, %p91_p3 }
   0xc   : > { %p115_p7 = scmp.eq.s32.totalorder %s610_s16, 1  ;;  %p121_p8 = scmp.eq.s32.totalorder %s389_s17, 1 }
   0xd   : > { %s752_s23 = scalar_select %p632_p6, 1, 0 }
   0xe   : > { %p415_p10 = scmp.lt.s32.totalorder %s556_s15, 2  ;;  %p639_p11 = por %p115_p7, %p85_p0 }
   0xf   : > { %p643_p12 = por %p121_p8, %p91_p3  ;;  %s155_s26 = sand.u32 1, %s552_s14  }
  0x10   : > { %s753_s24 = scalar_select %p639_p11, 1, 0 }
  0x11   : > { %s754_s25 = scalar_select %p643_p12, 1, 0 }
  0x12   : > { %s393_s27 = sshll.u32 %s556_s15, 7  ;;  %s392_s28 = sshll.u32 %s155_s26, 3 }
  0x13   : > { %s652_s4 = scalar_lea.hbm %s747_s2, %s393_s27  ;;  %s159_s5 = scalar_lea.vmem [#allocation2], %s392_s28 }
  0x14   : > { %s166_s6 = sshll.u32 %s159_s5, 4  ;;  %p656_p13 = pnand %p415_p10, %p628_p5  ;;  %s660_s6 = int_to_ptr.vmem [resolvable:$true] %s166_s6 }
  0x15   : > { %s156_s8 = scalar_lea.sflag [#allocation3], %s155_s26  ;;  %s464_s9 = scalar_lea.hbm %s652_s4, 128 }
  0x16   : > { %p465_p2 = scmp.ne.s32.totalorder %s652_s4, %s464_s9  ;;  %p466_p3 = pneg %p656_p13 }
  0x17   : > { %s469_s17 = scalar_lea.hbm %s747_s2, 256  ;;  %p470_p5 = scmp.lt.s32.totalorder %s652_s4, %s747_s2 }
  0x18   : > { %p467_p4 = pnand %p466_p3, %p465_p2  ;;  %p471_p8 = scmp.lt.s32.totalorder %s469_s17, %s464_s9 }
  0x1a   : > { %p468_p7 = pneg %p467_p4  ;;  %p472_p10 = por %p471_p8, %p470_p5 }
  0x1c   : > { %p473_p9 = pnand %p472_p10, %p468_p7 }
  0x1e   : > { %476 = shalt.err (!%p473_p9)
}
  0x1f   : > { %s477_s22 = scalar_lea.vmem %s660_s6, 128  ;;  %s558_s26 = smov [#allocation2]  }
  0x20   : > { %p478_p0 = scmp.ne.s32.totalorder %s660_s6, %s477_s22  ;;  %s482_s27 = sshll.u32 %s558_s26, 4  ;;  %s483_s27 = int_to_ptr.vmem [resolvable:$false] %s482_s27 }
  0x21   : > { %s484_s28 = scalar_lea.vmem %s483_s27, 256  ;;  %p485_p4 = scmp.lt.s32.totalorder %s660_s6, %s483_s27 }
  0x22   : > { %p480_p1 = pnand %p478_p0, %p466_p3  ;;  %p486_p12 = scmp.lt.s32.totalorder %s484_s28, %s477_s22 }
  0x24   : > { %p481_p2 = pneg %p480_p1  ;;  %p487_p11 = por %p486_p12, %p485_p4 }
  0x26   : > { %p488_p6 = pnand %p487_p11, %p481_p2 }
  0x28   : > { %491 = shalt.err (!%p488_p6)
}
  0x29   : > { %410 = dma.hbm_to_vmem [thread:$0]  (!%p656_p13), %s652_s4, 128, %s660_s6, %s156_s8  }
  0x2a   : > { %p756_p9 = scmp.lt.s32.totalorder %s556_s15, 3  ;;  %p757_p7 = scmp.ge.s32.totalorder %s556_s15, 1 }
  0x2c   : > { %p172_p0 = pnand %p757_p7, %p756_p9 }
  0x2d   : > { %s687_s29 = sand.u32 (!%p172_p0), 1, %s548_s13   ;;  %p758_p6 = scmp.ne.s32.totalorder (!%p172_p0), %s752_s23, 0 }
  0x2e   : > { %175 = sbr.rel (%p172_p0) target bundleno = 220 (0xdc), region = 32  ;;  %s395_s30 = sshll.u32 (!%p172_p0), %s687_s29, 3 }
  0x2f   : > { %s178_s5 = scalar_lea.sflag (!%p172_p0), [#allocation3], %s687_s29  ;;  %s693_s7 = scalar_lea.vmem (!%p172_p0), [#allocation2], %s395_s30 }
  0x33   : > { %535 = dma.done.wait (%p758_p6), %s178_s5, 128  }
  0x34   : > { %537 = vsyncadd (%p758_p6), %s178_s5, 4294967168  ;;  %p212_p11 = scmp.lt.s32.totalorder %s610_s16, 1  ;;  %v559_v0 = vmov 0   ;;  %v560_v1 = vmov 2   ;;  %s561_s23 = smov 2   ;;  %v562_v4 = vmov 1   ;;  %v222_v7 = vlaneseq }
  0x35   : > { %458 = vset.pattern.permute.xlu0 %v559_v0  ;;  %460 = vset.pattern.permute.xlu1 %v560_v1  ;;  %s563_s20 = smov 1   ;;  %v564_v5 = vmov 3   ;;  %v565_v6 = vmov 4   ;;  %s566_s22 = smov 126   ;;  %v224_v16 = vld [vmem:[%s693_s7] sm:$0xff] }
  0x36   : > { %s213_s4 = scalar_select %p212_p11, %s610_s16, 1  ;;  %v223_v8 = vand.u32 127, %v222_v7 }
  0x37   : > { %s567_s26 = smov 127   ;;  %s400_s27 = sshll.u32 %s610_s16, 7 }
  0x38   : > { %s397_s6 = sshll.u32 %s213_s4, 3  ;;  %vm227_vm0 = vcmp.ge.s32.totalorder %v223_v8, 2  ;;  %vm240_vm1 = vcmp.ge.s32.totalorder %v223_v8, 1  ;;  %vm270_vm2 = vcmp.lt.s32.totalorder %v223_v8, 126  ;;  %vm258_vm3 = vcmp.lt.s32.totalorder %v223_v8, 127  ;;  %s211_s28 = scalar_lea.vmem [#allocation5], %s395_s30 }
  0x39   : > { %s219_s10 = scalar_lea.vmem %s746_s1, %s397_s6  ;;  %s215_s19 = scalar_lea.vmem %s745_s0, %s397_s6 }
  0x3a   : > { %v221_v2 = vld [vmem:[%s219_s10] sm:$0xff]  ;;  %s295_s5 = sshll.u32 %s211_s28, 4  ;;  %s293_s6 = scalar_lea.hbm %s748_s3, %s400_s27  ;;  %s296_s5 = int_to_ptr.vmem [resolvable:$true] %s295_s5 }
  0x3b   : > { %v220_v3 = vld [vmem:[%s215_s19] sm:$0xff]  ;;  %233 = vperm.xlu0 %458, %v221_v2   ;;  %s282_s8 = scalar_lea.sflag [#allocation4], %s687_s29  ;;  %s492_s9 = scalar_lea.vmem %s296_s5, 128 }
  0x3c   : > { %225 = vrot.lane.b32.xlu1 %v220_v3, %s561_s23  ;;  %p493_p12 = scmp.ne.s32.totalorder %s296_s5, %s492_s9  ;;  %p759_p13 = scmp.ne.s32.totalorder %s753_s24, 0 }
  0x3d   : > { %s568_s10 = smov [#allocation5]  }
  0x3e   : > { %p494_p1 = pnand %p493_p12, %p759_p13  ;;  %s496_s16 = sshll.u32 %s568_s10, 4  ;;  %s497_s16 = int_to_ptr.vmem [resolvable:$false] %s496_s16 }
  0x3f   : > { %459 = vset.pattern.permute.xlu0 %v562_v4  ;;  %s498_s30 = scalar_lea.vmem %s497_s16, 256  ;;  %p499_p5 = scmp.lt.s32.totalorder %s296_s5, %s497_s16 }
  0x40   : > { %251 = vperm.xlu1 %460, %v221_v2   ;;  %245 = vperm.xlu0 %459, %v221_v2   ;;  %p495_p3 = pneg %p494_p1  ;;  %p500_p8 = scmp.lt.s32.totalorder %s498_s30, %s492_s9 }
  0x42   : > { %p501_p10 = por %p500_p8, %p499_p5 }
  0x44   : > { %238 = vrot.lane.b32.xlu1 %v220_v3, %s563_s20  ;;  %461 = vset.pattern.permute.xlu0 %v564_v5  ;;  %p502_p2 = pnand %p501_p10, %p495_p3 }
  0x45   : > { %462 = vset.pattern.permute.xlu1 %v565_v6  ;;  %263 = vperm.xlu0 %461, %v221_v2  }
  0x48   : > { %275 = vperm.xlu1 %462, %v221_v2  }
  0x49   : > { %268 = vrot.lane.b32.xlu0 %v220_v3, %s566_s22 }
  0x4a   : > { %463 = vset.pattern.permute.xlu0 %v565_v6 }
  0x4c   : > { %256 = vrot.lane.b32.xlu1 %v220_v3, %s567_s26 }
  0xae   : > { %v226_v9 = vpop.permute.xlu1 %225 }
  0xaf   : > { %v230_v13 = vsel %vm227_vm0, %v226_v9, 0.0 }
  0xb6   : > { %v234_v10 = vpop.permute.xlu0 %233 }
  0xb7   : > { %v236_v14 = vmul.f32 %v234_v10, %v230_v13 }
  0xb9   : > { %v237_v20 = vadd.f32 %v236_v14, %v224_v16 }
  0xbb   : > { %v252_v11 = vpop.permute.xlu1 %251  ;;  %v246_v12 = vpop.permute.xlu0 %245 }
  0xbc   : > { %v254_v24 = vmul.f32 %v252_v11, %v220_v3 }
  0xbf   : > { %v239_v15 = vpop.permute.xlu1 %238 }
  0xc0   : > { %v243_v17 = vsel %vm240_vm1, %v239_v15, 0.0  ;;  %v264_v19 = vpop.permute.xlu0 %263 }
  0xc1   : > { %v248_v18 = vmul.f32 %v246_v12, %v243_v17 }
  0xc3   : > { %v276_v21 = vpop.permute.xlu1 %275  ;;  %v249_v22 = vadd.f32 %v248_v18, %v237_v20 }
  0xc4   : > { %v269_v23 = vpop.permute.xlu0 %268 }
  0xc5   : > { %v273_v26 = vsel %vm270_vm2, %v269_v23, 0.0  ;;  %v255_v28 = vadd.f32 %v254_v24, %v249_v22 }
  0xc6   : > { %v278_v30 = vmul.f32 %v276_v21, %v273_v26 }
  0xc7   : > { %v257_v25 = vpop.permute.xlu1 %256 }
  0xc8   : > { %v261_v27 = vsel %vm258_vm3, %v257_v25, 0.0 }
  0xc9   : > { %v266_v29 = vmul.f32 %v264_v19, %v261_v27 }
  0xcb   : > { %v267_v31 = vadd.f32 %v266_v29, %v255_v28 }
  0xcd   : > { %v279_v32 = vadd.f32 %v278_v30, %v267_v31 }
  0xcf   : > { %280 = vst [vmem:[%s211_s28] sm:$0xff] %v279_v32 }
  0xd0   : > { %505 = shalt.err (!%p502_p2)
}
  0xd1   : > { %s506_s11 = scalar_lea.hbm %s293_s6, 128  ;;  %s510_s19 = scalar_lea.hbm %s748_s3, 256 }
  0xd2   : > { %p507_p4 = scmp.ne.s32.totalorder %s293_s6, %s506_s11  ;;  %p511_p0 = scmp.lt.s32.totalorder %s293_s6, %s748_s3 }
  0xd3   : > { %p512_p6 = scmp.lt.s32.totalorder %s510_s19, %s506_s11 }
  0xd4   : > { %p508_p9 = pnand %p507_p4, %p759_p13 }
  0xd5   : > { %p513_p11 = por %p512_p6, %p511_p0 }
  0xd6   : > { %p509_p7 = pneg %p508_p9 }
  0xd8   : > { %p514_p12 = pnand %p513_p11, %p509_p7 }
  0xda   : > { %517 = shalt.err (!%p514_p12)
}
  0xdb   : > { %405 = dma.vmem_to_hbm [thread:$0]  (%p759_p13), %s296_s5, 128, %s293_s6, %s282_s8  }
  0xdc PF: > { %s307_s22 = sand.u32 1, %s544_s12   ;;  %p760_p1 = scmp.ne.s32.totalorder %s754_s25, 0 }
  0xdd   : > { %p761_p3 = scmp.ge.s32.totalorder %s556_s15, 2  ;;  %s308_s26 = scalar_lea.sflag [#allocation4], %s307_s22 }
  0xdf   : > { %p412_p5 = pnand %p761_p3, %p760_p1 }
  0xe1   : > { %p413_p8 = pneg %p412_p5 }
  0xe3   : > { %539 = dma.done.wait (%p413_p8), %s308_s26, 128  }
  0xe4   : > { %541 = vsyncadd (%p413_p8), %s308_s26, 4294967168  ;;  %p16_p10 = scmp.ge.s32.totalorder %s614_s18, 4   ;;  %s762_s12 = smov %s548_s13 }
  0xe5   : > { %s763_s13 = smov %s552_s14  ;;  %s764_s14 = smov %s626_s21 }
  0xe6   : > { %s765_s15 = smov %s614_s18  ;;  %18 = sbr.rel (!%p16_p10) target bundleno = 5 (0x5), region = 83 }
  0xeb   :  { %313 = vsyncpa [#allocation3], 1 }
  0xec   :  { %315 = vsyncpa [#allocation3 + $0x1], 1 }
  0xed   :  { %316 = vsyncpa [#allocation4], 1 }
  0xee   :  { %318 = vsyncpa [#allocation4 + $0x1], 1 }

</bundles_post_ra>
